<compile_context>
chip_gen: v6e
topology: v6e:2x2x1
jax: 0.10.0
libtpu: 0.0.40
codegen_flags: <defaults>
</compile_context>

<pallas_src>
import jax
import jax.numpy as jnp
import numpy as np
from jax.experimental import pallas as pl
from jax.experimental.pallas import tpu as pltpu

# ----------------------------- config ------------------------------------
BATCH = 16
LATENT_DIM = 16
HIDDEN_DIM = 32
DEPTH = 2
DROPOUT_PROB = 0.0          # eval-mode / p=0 dropout == identity
N_NODES = 8
N_ITERS = 2

E = N_NODES * (N_NODES - 1) // 2        # 28 upper-triangle edges
E_PAD = 32                              # lane-padded edge count
OUT_PAD = 128                           # lane-dense output width (>= n_nodes^2)
LN_EPS = 1e-5

assert HIDDEN_DIM == E_PAD, "weight pack assumes hidden width == padded edge width (32 lanes)"


def _round_up(a, m):
    return (a + m - 1) // m * m


def _ru8(n):
    return _round_up(n, 8)


# --------------------- packed-parameter row layout -------------------------
# One (TOTAL_ROWS, 32) f32 slab; every section starts on an 8-row boundary.
PACK_W = 32
OFF_W0 = 0                                   # (latent, hidden)
OFF_B0 = OFF_W0 + _ru8(LATENT_DIM)           # row OFF_B0 : b0
OFF_BLK = OFF_B0 + 8                         # per-depth blocks
BLK_ROWS = 2 * HIDDEN_DIM + 8                # w1 (32) | w2 (32) | lnw,lnb,b2 rows (8)
OFF_WD = OFF_BLK + DEPTH * BLK_ROWS          # fused topology weight we - wo
OFF_BD = OFF_WD + _ru8(HIDDEN_DIM)           # row OFF_BD : be - bo (padded lanes = -1e30)
OFF_WG = OFF_BD + 8                          # gumbel2hidden weight (E_pad, hidden)
OFF_BG = OFF_WG + _ru8(E_PAD)                # row OFF_BG : bg
TOTAL_ROWS = OFF_BG + 8

# --------------------- lane-dense packed input layout ----------------------
# [ x (latent) | zero pad to 32 | gd_0 (32) | gd_1 (32) | ... | gd_niters (32) ]
X_LANE = 0
GD_LANE0 = _round_up(LATENT_DIM, E_PAD)
IN_W = _round_up(GD_LANE0 + (N_ITERS + 1) * E_PAD, 128)     # 128 for this config


def _elu(v):
    # NOTE: exp(v)-1 (not expm1); ~1e-7 off torch ELU near zero.
    return jnp.where(v > 0, v, jnp.exp(v) - 1.0)


# ----------------------------- kernel ------------------------------------
def generator_kernel(in_ref, wp_ref, ssym_ref, out_ref):
    # latent -> hidden
    x = in_ref[:, X_LANE:X_LANE + LATENT_DIM]                 # (BM, latent)
    w0 = wp_ref[OFF_W0:OFF_W0 + LATENT_DIM, :]                # (latent, H)
    b0 = wp_ref[OFF_B0:OFF_B0 + 1, :]                         # (1, H) implicit broadcast
    h = jnp.dot(x, w0, preferred_element_type=jnp.float32) + b0

    # Hoist per-depth weight loads (and their bf16 casts) out of the unrolled
    # n_iters loop.  Per-row affines stay (1, H) and broadcast implicitly.
    blocks = []
    for r in range(DEPTH):
        base = OFF_BLK + r * BLK_ROWS
        w1 = wp_ref[base:base + HIDDEN_DIM, :].astype(jnp.bfloat16)                   # (H, H)
        w2 = wp_ref[base + HIDDEN_DIM:base + 2 * HIDDEN_DIM, :].astype(jnp.bfloat16)  # (H, H)
        a = base + 2 * HIDDEN_DIM
        lnw = wp_ref[a + 0:a + 1, :]                           # (1, H)
        lnb = wp_ref[a + 1:a + 2, :]                           # (1, H)
        b2 = wp_ref[a + 2:a + 3, :]                            # (1, H)
        blocks.append((w1, w2, lnw, lnb, b2))

    wd = wp_ref[OFF_WD:OFF_WD + HIDDEN_DIM, :]                 # (H, E_pad), f32 decision
    bd = wp_ref[OFF_BD:OFF_BD + 1, :]                          # (1, E_pad), pad lanes = -1e30
    wg = wp_ref[OFF_WG:OFF_WG + E_PAD, :].astype(jnp.bfloat16)  # (E_pad, H)
    bg = wp_ref[OFF_BG:OFF_BG + 1, :]                          # (1, H)

    def hard_gumbel(h, it):
        # Single fused difference matmul: class-0 wins iff
        # (t0 + g0) - (t1 + g1) = h@wd + bd + gd >= 0 (ties -> class 0, like argmax).
        # Padded lanes carry bd = -1e30, so gb there is exactly 0.
        gd = in_ref[:, GD_LANE0 + it * E_PAD:GD_LANE0 + (it + 1) * E_PAD]   # (BM, E_pad)
        d = jnp.dot(h, wd, preferred_element_type=jnp.float32) + bd + gd
        return jnp.where(d >= 0.0, 1.0, 0.0)

    for it in range(N_ITERS):
        for (w1, w2, lnw, lnb, b2) in blocks:
            # LayerNorm (biased variance via E[h^2]-mu^2, eps=1e-5, affine)
            mu = jnp.mean(h, axis=-1, keepdims=True)
            msq = jnp.mean(h * h, axis=-1, keepdims=True)
            hn = (h - mu) * jax.lax.rsqrt(msq - mu * mu + LN_EPS)
            hn = hn * lnw + lnb
            z = _elu(jnp.dot(hn.astype(jnp.bfloat16), w1,
                             preferred_element_type=jnp.float32))
            # TODO(synk): train-mode Dropout randomness not reproduced; p=0 / eval == identity.
            z = jnp.dot(z.astype(jnp.bfloat16), w2,
                        preferred_element_type=jnp.float32) + b2
            h = h + z
        gb = hard_gumbel(h, it)                                            # (BM, E_pad) in {0,1}
        h = h + _elu(jnp.dot(gb.astype(jnp.bfloat16), wg,
                             preferred_element_type=jnp.float32) + bg)

    gb = hard_gumbel(h, N_ITERS)                                           # final topology sample
    # Scatter to (i,j) and (j,i) simultaneously via the symmetric scatter matrix.
    # Output is lane-dense (BM, 128); padded cols are zero.
    out_ref[...] = jnp.dot(gb, ssym_ref[...], preferred_element_type=jnp.float32)


# ----------------------------- wrapper -----------------------------------
def generator_forward(packed, x, gd, *, block_b=512):
    """x: (B, latent); gd: (n_iters+1, B, E) = gumbel_class0 - gumbel_class1."""
    B = x.shape[0]

    # Build the lane-dense (B, IN_W) input slab: x | pad | gd_0 | ... | gd_niters
    gd_p = jnp.pad(gd.astype(jnp.float32), ((0, 0), (0, 0), (0, E_PAD - E)))
    parts = [x.astype(jnp.float32)]
    if GD_LANE0 > LATENT_DIM:
        parts.append(jnp.zeros((B, GD_LANE0 - LATENT_DIM), jnp.float32))
    parts += [gd_p[i] for i in range(N_ITERS + 1)]
    slab = jnp.concatenate(parts, axis=1)
    if slab.shape[1] < IN_W:
        slab = jnp.pad(slab, ((0, 0), (0, IN_W - slab.shape[1])))

    # Batch tiling: one fat block for small batches (grid=(1,)); otherwise
    # block_b-sized tiles with an even step count so both v7x TensorCores work.
    if B <= block_b:
        BM = _ru8(B)
        n_blk = 1
    else:
        BM = block_b
        n_blk = pl.cdiv(B, BM)
        if n_blk % 2:
            n_blk += 1
    B_pad = n_blk * BM
    if B_pad != B:
        slab = jnp.pad(slab, ((0, B_pad - B), (0, 0)))

    wp, ssym = packed["wp"], packed["ssym"]

    out = pl.pallas_call(
        generator_kernel,
        out_shape=jax.ShapeDtypeStruct((B_pad, OUT_PAD), jnp.float32),
        grid_spec=pltpu.PrefetchScalarGridSpec(
            num_scalar_prefetch=0,
            grid=(n_blk,),
            in_specs=[
                pl.BlockSpec((BM, IN_W), lambda i: (i, 0)),
                pl.BlockSpec(wp.shape, lambda i: (0, 0)),     # resident across grid
                pl.BlockSpec(ssym.shape, lambda i: (0, 0)),   # resident across grid
            ],
            out_specs=pl.BlockSpec((BM, OUT_PAD), lambda i: (i, 0)),
        ),
        compiler_params=pltpu.CompilerParams(
            dimension_semantics=("parallel",)),               # v7x: both TCs when grid > 1
    )(slab, wp, ssym)

    return out[:B, :N_NODES * N_NODES].reshape(B, N_NODES, N_NODES)


# ----------------------------- params ------------------------------------
def init_params(key):
    def linear(k, fan_in, fan_out):
        bound = 1.0 / np.sqrt(fan_in)
        kw, kb = jax.random.split(k)
        w = jax.random.uniform(kw, (fan_in, fan_out), jnp.float32, -bound, bound)
        b = jax.random.uniform(kb, (fan_out,), jnp.float32, -bound, bound)
        return w, b

    keys = jax.random.split(key, 4)
    w0, b0 = linear(keys[0], LATENT_DIM, HIDDEN_DIM)

    blk_keys = jax.random.split(keys[1], 2 * DEPTH)
    w1, w2, b2 = [], [], []
    for r in range(DEPTH):
        w1r, _ = linear(blk_keys[2 * r], HIDDEN_DIM, HIDDEN_DIM)        # bias=False
        w2r, b2r = linear(blk_keys[2 * r + 1], HIDDEN_DIM, HIDDEN_DIM)
        w1.append(w1r); w2.append(w2r); b2.append(b2r)
    w1 = jnp.stack(w1); w2 = jnp.stack(w2); b2 = jnp.stack(b2)
    lnw = jnp.ones((DEPTH, HIDDEN_DIM), jnp.float32)                    # LN defaults
    lnb = jnp.zeros((DEPTH, HIDDEN_DIM), jnp.float32)

    wt, bt = linear(keys[2], HIDDEN_DIM, 2 * E)   # hidden2topology
    # interleaved (pair) columns -> class-0 / class-1 logit weights
    we, wo = wt[:, 0::2], wt[:, 1::2]
    be, bo = bt[0::2], bt[1::2]

    wg, bg = linear(keys[3], E, HIDDEN_DIM)       # gumbel2hidden Linear

    return dict(w0=w0, b0=b0, lnw=lnw, lnb=lnb, w1=w1, w2=w2, b2=b2,
                we=we, be=be, wo=wo, bo=bo, wg=wg, bg=bg)


def pack_params(p):
    """Pack all small parameters into one (TOTAL_ROWS, 32) slab + (32, 128) scatter."""
    wp = np.zeros((TOTAL_ROWS, PACK_W), np.float32)
    wp[OFF_W0:OFF_W0 + LATENT_DIM, :HIDDEN_DIM] = np.asarray(p["w0"])
    wp[OFF_B0, :HIDDEN_DIM] = np.asarray(p["b0"])
    for r in range(DEPTH):
        base = OFF_BLK + r * BLK_ROWS
        wp[base:base + HIDDEN_DIM, :HIDDEN_DIM] = np.asarray(p["w1"][r])
        wp[base + HIDDEN_DIM:base + 2 * HIDDEN_DIM, :HIDDEN_DIM] = np.asarray(p["w2"][r])
        a = base + 2 * HIDDEN_DIM
        wp[a + 0, :HIDDEN_DIM] = np.asarray(p["lnw"][r])
        wp[a + 1, :HIDDEN_DIM] = np.asarray(p["lnb"][r])
        wp[a + 2, :HIDDEN_DIM] = np.asarray(p["b2"][r])
    # fused topology difference weights (class0 - class1), zero-padded to E_PAD lanes
    wp[OFF_WD:OFF_WD + HIDDEN_DIM, :E] = np.asarray(p["we"] - p["wo"])
    wp[OFF_BD, :E] = np.asarray(p["be"] - p["bo"])
    wp[OFF_BD, E:E_PAD] = -1e30       # force padded topology lanes to gb == 0 explicitly
    wp[OFF_WG:OFF_WG + E, :HIDDEN_DIM] = np.asarray(p["wg"])
    wp[OFF_BG, :HIDDEN_DIM] = np.asarray(p["bg"])

    # symmetric scatter matrix: edge k -> positions (i*n+j) and (j*n+i); lane-padded to 128
    rows, cols = np.triu_indices(N_NODES, k=1)
    ssym = np.zeros((E_PAD, OUT_PAD), np.float32)
    ssym[np.arange(E), rows * N_NODES + cols] = 1.0
    ssym[np.arange(E), cols * N_NODES + rows] = 1.0

    return dict(wp=jnp.asarray(wp), ssym=jnp.asarray(ssym))


# ----------------------------- reference ---------------------------------
def reference_forward(p, x, gd):
    """Plain-JAX reference mirroring the kernel's fused-difference decision,
    E[h^2]-mu^2 LayerNorm and bf16-input matmuls (f32 accumulation)."""
    def bdot(a, b):
        return jnp.dot(a.astype(jnp.bfloat16), b.astype(jnp.bfloat16),
                       preferred_element_type=jnp.float32)

    wd = p["we"] - p["wo"]
    bd = p["be"] - p["bo"]
    h = x @ p["w0"] + p["b0"]

    def gumbel_dec(h, it):
        d = h @ wd + bd + gd[it]
        return (d >= 0).astype(jnp.float32)

    for it in range(N_ITERS):
        for r in range(DEPTH):
            mu = h.mean(-1, keepdims=True)
            msq = (h * h).mean(-1, keepdims=True)
            hn = (h - mu) * jax.lax.rsqrt(msq - mu * mu + LN_EPS)
            hn = hn * p["lnw"][r] + p["lnb"][r]
            z = _elu(bdot(hn, p["w1"][r]))
            z = bdot(z, p["w2"][r]) + p["b2"][r]
            h = h + z
        gb = gumbel_dec(h, it)
        h = h + _elu(bdot(gb, p["wg"]) + p["bg"])
    gb = gumbel_dec(h, N_ITERS)

    rows, cols = np.triu_indices(N_NODES, k=1)
    adj = jnp.zeros((x.shape[0], N_NODES, N_NODES), jnp.float32)
    adj = adj.at[:, rows, cols].set(gb)
    return adj + adj.transpose(0, 2, 1)


# ------------------------------- main -------------------------------------
if __name__ == "__main__":
    key = jax.random.PRNGKey(0)
    k_param, k_x, k_g = jax.random.split(key, 3)

    params = init_params(k_param)
    packed = pack_params(params)
    x = jax.random.normal(k_x, (BATCH, LATENT_DIM), jnp.float32)

    # One Gumbel(0,1) draw per gumbel-softmax call (n_iters in-loop + 1 final);
    # only the class-0 minus class-1 difference is needed.
    gumbel = jax.random.gumbel(k_g, (N_ITERS + 1, BATCH, E, 2), jnp.float32)
    gd = gumbel[..., 0] - gumbel[..., 1]

    adj_ref = reference_forward(params, x, gd)

    # Production-style path: whole batch in one fat block (grid=(1,)).
    adj = jax.block_until_ready(generator_forward(packed, x, gd))
    assert adj.shape == (BATCH, N_NODES, N_NODES)
    np.testing.assert_allclose(np.asarray(adj), np.asarray(adj_ref), atol=1e-5)

    # Multi-step "parallel" batch grid path (even step count -> both v7x TCs).
    adj2 = jax.block_until_ready(generator_forward(packed, x, gd, block_b=8))
    np.testing.assert_allclose(np.asarray(adj2), np.asarray(adj_ref), atol=1e-5)

    # sanity: symmetric, zero diagonal, binary entries
    a = np.asarray(adj)
    assert np.allclose(a, a.transpose(0, 2, 1))
    assert np.all(np.abs(np.diagonal(a, axis1=1, axis2=2)) < 1e-6)
    assert np.all((np.abs(a) < 1e-6) | (np.abs(a - 1.0) < 1e-6))
    print("KERNEL_OK")
</pallas_src>

<mosaic_0001>
module attributes {stable_mosaic.version = 11 : i64} {
  func.func @generator_kernel(%arg0: i32, %arg1: memref<16x128xf32, #tpu.memory_space<vmem>>, %arg2: memref<248x32xf32, #tpu.memory_space<vmem>>, %arg3: memref<32x128xf32, #tpu.memory_space<vmem>>, %arg4: memref<16x128xf32, #tpu.memory_space<vmem>>) attributes {dimension_semantics = [#tpu.dimension_semantics<parallel>], iteration_bounds = array<i64: 1>, scalar_prefetch = 0 : i64, scratch_operands = 0 : i64, tpu.core_type = #tpu.core_type<tc>, window_params = [{transform_indices = @transform_0, window_bounds = array<i64: 16, 128>}, {pipeline_mode = #tpu.pipeline_mode<synchronous>, transform_indices = @transform_1, window_bounds = array<i64: 248, 32>}, {pipeline_mode = #tpu.pipeline_mode<synchronous>, transform_indices = @transform_2, window_bounds = array<i64: 32, 128>}, {transform_indices = @transform_3, window_bounds = array<i64: 16, 128>}]} {
    %c0 = arith.constant 0 : index
    %c0_0 = arith.constant 0 : index
    %0 = vector.load %arg1[%c0, %c0_0] : memref<16x128xf32, #tpu.memory_space<vmem>>, vector<16x16xf32>
    %c0_1 = arith.constant 0 : index
    %c0_2 = arith.constant 0 : index
    %1 = vector.load %arg2[%c0_1, %c0_2] : memref<248x32xf32, #tpu.memory_space<vmem>>, vector<16x32xf32>
    %c16 = arith.constant 16 : index
    %c0_3 = arith.constant 0 : index
    %2 = vector.load %arg2[%c16, %c0_3] : memref<248x32xf32, #tpu.memory_space<vmem>>, vector<1x32xf32>
    %cst = arith.constant dense<0.000000e+00> : vector<16x32xf32>
    %3 = tpu.matmul %0, %1, %cst {dimension_numbers = #tpu.dot_dimension_numbers<[1], [0], [0], [1], [0, 0, 1, 1], [], []>} : vector<16x16xf32>, vector<16x32xf32>, vector<16x32xf32> -> vector<16x32xf32>
    %4 = vector.broadcast %2 : vector<1x32xf32> to vector<16x32xf32>
    %5 = arith.addf %3, %4 : vector<16x32xf32>
    %c24 = arith.constant 24 : index
    %c0_4 = arith.constant 0 : index
    %6 = vector.load %arg2[%c24, %c0_4] : memref<248x32xf32, #tpu.memory_space<vmem>>, vector<32x32xf32>
    %7 = arith.truncf %6 : vector<32x32xf32> to vector<32x32xbf16>
    %c56 = arith.constant 56 : index
    %c0_5 = arith.constant 0 : index
    %8 = vector.load %arg2[%c56, %c0_5] : memref<248x32xf32, #tpu.memory_space<vmem>>, vector<32x32xf32>
    %9 = arith.truncf %8 : vector<32x32xf32> to vector<32x32xbf16>
    %c88 = arith.constant 88 : index
    %c0_6 = arith.constant 0 : index
    %10 = vector.load %arg2[%c88, %c0_6] : memref<248x32xf32, #tpu.memory_space<vmem>>, vector<1x32xf32>
    %c89 = arith.constant 89 : index
    %c0_7 = arith.constant 0 : index
    %11 = vector.load %arg2[%c89, %c0_7] : memref<248x32xf32, #tpu.memory_space<vmem>>, vector<1x32xf32>
    %c90 = arith.constant 90 : index
    %c0_8 = arith.constant 0 : index
    %12 = vector.load %arg2[%c90, %c0_8] : memref<248x32xf32, #tpu.memory_space<vmem>>, vector<1x32xf32>
    %c96 = arith.constant 96 : index
    %c0_9 = arith.constant 0 : index
    %13 = vector.load %arg2[%c96, %c0_9] : memref<248x32xf32, #tpu.memory_space<vmem>>, vector<32x32xf32>
    %14 = arith.truncf %13 : vector<32x32xf32> to vector<32x32xbf16>
    %c128 = arith.constant 128 : index
    %c0_10 = arith.constant 0 : index
    %15 = vector.load %arg2[%c128, %c0_10] : memref<248x32xf32, #tpu.memory_space<vmem>>, vector<32x32xf32>
    %16 = arith.truncf %15 : vector<32x32xf32> to vector<32x32xbf16>
    %c160 = arith.constant 160 : index
    %c0_11 = arith.constant 0 : index
    %17 = vector.load %arg2[%c160, %c0_11] : memref<248x32xf32, #tpu.memory_space<vmem>>, vector<1x32xf32>
    %c161 = arith.constant 161 : index
    %c0_12 = arith.constant 0 : index
    %18 = vector.load %arg2[%c161, %c0_12] : memref<248x32xf32, #tpu.memory_space<vmem>>, vector<1x32xf32>
    %c162 = arith.constant 162 : index
    %c0_13 = arith.constant 0 : index
    %19 = vector.load %arg2[%c162, %c0_13] : memref<248x32xf32, #tpu.memory_space<vmem>>, vector<1x32xf32>
    %c168 = arith.constant 168 : index
    %c0_14 = arith.constant 0 : index
    %20 = vector.load %arg2[%c168, %c0_14] : memref<248x32xf32, #tpu.memory_space<vmem>>, vector<32x32xf32>
    %c200 = arith.constant 200 : index
    %c0_15 = arith.constant 0 : index
    %21 = vector.load %arg2[%c200, %c0_15] : memref<248x32xf32, #tpu.memory_space<vmem>>, vector<1x32xf32>
    %c208 = arith.constant 208 : index
    %c0_16 = arith.constant 0 : index
    %22 = vector.load %arg2[%c208, %c0_16] : memref<248x32xf32, #tpu.memory_space<vmem>>, vector<32x32xf32>
    %23 = arith.truncf %22 : vector<32x32xf32> to vector<32x32xbf16>
    %c240 = arith.constant 240 : index
    %c0_17 = arith.constant 0 : index
    %24 = vector.load %arg2[%c240, %c0_17] : memref<248x32xf32, #tpu.memory_space<vmem>>, vector<1x32xf32>
    %cst_18 = arith.constant dense<0.000000e+00> : vector<16xf32>
    %25 = vector.multi_reduction <add>, %5, %cst_18 [1] : vector<16x32xf32> to vector<16xf32>
    %26 = vector.shape_cast %25 : vector<16xf32> to vector<16x1xf32>
    %cst_19 = arith.constant 3.200000e+01 : f32
    %27 = vector.broadcast %cst_19 : f32 to vector<16x1xf32>
    %28 = arith.divf %26, %27 : vector<16x1xf32>
    %29 = arith.mulf %5, %5 : vector<16x32xf32>
    %cst_20 = arith.constant dense<0.000000e+00> : vector<16xf32>
    %30 = vector.multi_reduction <add>, %29, %cst_20 [1] : vector<16x32xf32> to vector<16xf32>
    %31 = vector.shape_cast %30 : vector<16xf32> to vector<16x1xf32>
    %cst_21 = arith.constant 3.200000e+01 : f32
    %32 = vector.broadcast %cst_21 : f32 to vector<16x1xf32>
    %33 = arith.divf %31, %32 : vector<16x1xf32>
    %34 = vector.broadcast %28 : vector<16x1xf32> to vector<16x32xf32>
    %35 = arith.subf %5, %34 : vector<16x32xf32>
    %36 = arith.mulf %28, %28 : vector<16x1xf32>
    %37 = arith.subf %33, %36 : vector<16x1xf32>
    %cst_22 = arith.constant 9.99999974E-6 : f32
    %38 = vector.broadcast %cst_22 : f32 to vector<16x1xf32>
    %39 = arith.addf %37, %38 : vector<16x1xf32>
    %40 = math.rsqrt %39 : vector<16x1xf32>
    %41 = vector.broadcast %40 : vector<16x1xf32> to vector<16x32xf32>
    %42 = arith.mulf %35, %41 : vector<16x32xf32>
    %43 = vector.broadcast %10 : vector<1x32xf32> to vector<16x32xf32>
    %44 = arith.mulf %42, %43 : vector<16x32xf32>
    %45 = vector.broadcast %11 : vector<1x32xf32> to vector<16x32xf32>
    %46 = arith.addf %44, %45 : vector<16x32xf32>
    %47 = arith.truncf %46 : vector<16x32xf32> to vector<16x32xbf16>
    %cst_23 = arith.constant dense<0.000000e+00> : vector<16x32xf32>
    %48 = tpu.matmul %47, %7, %cst_23 {dimension_numbers = #tpu.dot_dimension_numbers<[1], [0], [0], [1], [0, 0, 1, 1], [], []>} : vector<16x32xbf16>, vector<32x32xbf16>, vector<16x32xf32> -> vector<16x32xf32>
    %cst_24 = arith.constant 0.000000e+00 : f32
    %49 = vector.broadcast %cst_24 : f32 to vector<16x32xf32>
    %50 = arith.cmpf ogt, %48, %49 : vector<16x32xf32>
    %51 = math.exp %48 : vector<16x32xf32>
    %cst_25 = arith.constant 1.000000e+00 : f32
    %52 = vector.broadcast %cst_25 : f32 to vector<16x32xf32>
    %53 = arith.subf %51, %52 : vector<16x32xf32>
    %54 = arith.select %50, %48, %53 : vector<16x32xi1>, vector<16x32xf32>
    %55 = arith.truncf %54 : vector<16x32xf32> to vector<16x32xbf16>
    %cst_26 = arith.constant dense<0.000000e+00> : vector<16x32xf32>
    %56 = tpu.matmul %55, %9, %cst_26 {dimension_numbers = #tpu.dot_dimension_numbers<[1], [0], [0], [1], [0, 0, 1, 1], [], []>} : vector<16x32xbf16>, vector<32x32xbf16>, vector<16x32xf32> -> vector<16x32xf32>
    %57 = vector.broadcast %12 : vector<1x32xf32> to vector<16x32xf32>
    %58 = arith.addf %56, %57 : vector<16x32xf32>
    %59 = arith.addf %5, %58 : vector<16x32xf32>
    %cst_27 = arith.constant dense<0.000000e+00> : vector<16xf32>
    %60 = vector.multi_reduction <add>, %59, %cst_27 [1] : vector<16x32xf32> to vector<16xf32>
    %61 = vector.shape_cast %60 : vector<16xf32> to vector<16x1xf32>
    %cst_28 = arith.constant 3.200000e+01 : f32
    %62 = vector.broadcast %cst_28 : f32 to vector<16x1xf32>
    %63 = arith.divf %61, %62 : vector<16x1xf32>
    %64 = arith.mulf %59, %59 : vector<16x32xf32>
    %cst_29 = arith.constant dense<0.000000e+00> : vector<16xf32>
    %65 = vector.multi_reduction <add>, %64, %cst_29 [1] : vector<16x32xf32> to vector<16xf32>
    %66 = vector.shape_cast %65 : vector<16xf32> to vector<16x1xf32>
    %cst_30 = arith.constant 3.200000e+01 : f32
    %67 = vector.broadcast %cst_30 : f32 to vector<16x1xf32>
    %68 = arith.divf %66, %67 : vector<16x1xf32>
    %69 = vector.broadcast %63 : vector<16x1xf32> to vector<16x32xf32>
    %70 = arith.subf %59, %69 : vector<16x32xf32>
    %71 = arith.mulf %63, %63 : vector<16x1xf32>
    %72 = arith.subf %68, %71 : vector<16x1xf32>
    %cst_31 = arith.constant 9.99999974E-6 : f32
    %73 = vector.broadcast %cst_31 : f32 to vector<16x1xf32>
    %74 = arith.addf %72, %73 : vector<16x1xf32>
    %75 = math.rsqrt %74 : vector<16x1xf32>
    %76 = vector.broadcast %75 : vector<16x1xf32> to vector<16x32xf32>
    %77 = arith.mulf %70, %76 : vector<16x32xf32>
    %78 = vector.broadcast %17 : vector<1x32xf32> to vector<16x32xf32>
    %79 = arith.mulf %77, %78 : vector<16x32xf32>
    %80 = vector.broadcast %18 : vector<1x32xf32> to vector<16x32xf32>
    %81 = arith.addf %79, %80 : vector<16x32xf32>
    %82 = arith.truncf %81 : vector<16x32xf32> to vector<16x32xbf16>
    %cst_32 = arith.constant dense<0.000000e+00> : vector<16x32xf32>
    %83 = tpu.matmul %82, %14, %cst_32 {dimension_numbers = #tpu.dot_dimension_numbers<[1], [0], [0], [1], [0, 0, 1, 1], [], []>} : vector<16x32xbf16>, vector<32x32xbf16>, vector<16x32xf32> -> vector<16x32xf32>
    %cst_33 = arith.constant 0.000000e+00 : f32
    %84 = vector.broadcast %cst_33 : f32 to vector<16x32xf32>
    %85 = arith.cmpf ogt, %83, %84 : vector<16x32xf32>
    %86 = math.exp %83 : vector<16x32xf32>
    %cst_34 = arith.constant 1.000000e+00 : f32
    %87 = vector.broadcast %cst_34 : f32 to vector<16x32xf32>
    %88 = arith.subf %86, %87 : vector<16x32xf32>
    %89 = arith.select %85, %83, %88 : vector<16x32xi1>, vector<16x32xf32>
    %90 = arith.truncf %89 : vector<16x32xf32> to vector<16x32xbf16>
    %cst_35 = arith.constant dense<0.000000e+00> : vector<16x32xf32>
    %91 = tpu.matmul %90, %16, %cst_35 {dimension_numbers = #tpu.dot_dimension_numbers<[1], [0], [0], [1], [0, 0, 1, 1], [], []>} : vector<16x32xbf16>, vector<32x32xbf16>, vector<16x32xf32> -> vector<16x32xf32>
    %92 = vector.broadcast %19 : vector<1x32xf32> to vector<16x32xf32>
    %93 = arith.addf %91, %92 : vector<16x32xf32>
    %94 = arith.addf %59, %93 : vector<16x32xf32>
    %c0_36 = arith.constant 0 : index
    %c32 = arith.constant 32 : index
    %95 = vector.load %arg1[%c0_36, %c32] : memref<16x128xf32, #tpu.memory_space<vmem>>, vector<16x32xf32>
    %cst_37 = arith.constant dense<0.000000e+00> : vector<16x32xf32>
    %96 = tpu.matmul %94, %20, %cst_37 {dimension_numbers = #tpu.dot_dimension_numbers<[1], [0], [0], [1], [0, 0, 1, 1], [], []>} : vector<16x32xf32>, vector<32x32xf32>, vector<16x32xf32> -> vector<16x32xf32>
    %97 = vector.broadcast %21 : vector<1x32xf32> to vector<16x32xf32>
    %98 = arith.addf %96, %97 : vector<16x32xf32>
    %99 = arith.addf %98, %95 : vector<16x32xf32>
    %cst_38 = arith.constant 0.000000e+00 : f32
    %100 = vector.broadcast %cst_38 : f32 to vector<16x32xf32>
    %101 = arith.cmpf oge, %99, %100 : vector<16x32xf32>
    %cst_39 = arith.constant 1.000000e+00 : f32
    %cst_40 = arith.constant 0.000000e+00 : f32
    %102 = vector.broadcast %cst_39 : f32 to vector<16x32xf32>
    %103 = vector.broadcast %cst_40 : f32 to vector<16x32xf32>
    %104 = arith.select %101, %102, %103 : vector<16x32xi1>, vector<16x32xf32>
    %105 = arith.truncf %104 : vector<16x32xf32> to vector<16x32xbf16>
    %cst_41 = arith.constant dense<0.000000e+00> : vector<16x32xf32>
    %106 = tpu.matmul %105, %23, %cst_41 {dimension_numbers = #tpu.dot_dimension_numbers<[1], [0], [0], [1], [0, 0, 1, 1], [], []>} : vector<16x32xbf16>, vector<32x32xbf16>, vector<16x32xf32> -> vector<16x32xf32>
    %107 = vector.broadcast %24 : vector<1x32xf32> to vector<16x32xf32>
    %108 = arith.addf %106, %107 : vector<16x32xf32>
    %cst_42 = arith.constant 0.000000e+00 : f32
    %109 = vector.broadcast %cst_42 : f32 to vector<16x32xf32>
    %110 = arith.cmpf ogt, %108, %109 : vector<16x32xf32>
    %111 = math.exp %108 : vector<16x32xf32>
    %cst_43 = arith.constant 1.000000e+00 : f32
    %112 = vector.broadcast %cst_43 : f32 to vector<16x32xf32>
    %113 = arith.subf %111, %112 : vector<16x32xf32>
    %114 = arith.select %110, %108, %113 : vector<16x32xi1>, vector<16x32xf32>
    %115 = arith.addf %94, %114 : vector<16x32xf32>
    %cst_44 = arith.constant dense<0.000000e+00> : vector<16xf32>
    %116 = vector.multi_reduction <add>, %115, %cst_44 [1] : vector<16x32xf32> to vector<16xf32>
    %117 = vector.shape_cast %116 : vector<16xf32> to vector<16x1xf32>
    %cst_45 = arith.constant 3.200000e+01 : f32
    %118 = vector.broadcast %cst_45 : f32 to vector<16x1xf32>
    %119 = arith.divf %117, %118 : vector<16x1xf32>
    %120 = arith.mulf %115, %115 : vector<16x32xf32>
    %cst_46 = arith.constant dense<0.000000e+00> : vector<16xf32>
    %121 = vector.multi_reduction <add>, %120, %cst_46 [1] : vector<16x32xf32> to vector<16xf32>
    %122 = vector.shape_cast %121 : vector<16xf32> to vector<16x1xf32>
    %cst_47 = arith.constant 3.200000e+01 : f32
    %123 = vector.broadcast %cst_47 : f32 to vector<16x1xf32>
    %124 = arith.divf %122, %123 : vector<16x1xf32>
    %125 = vector.broadcast %119 : vector<16x1xf32> to vector<16x32xf32>
    %126 = arith.subf %115, %125 : vector<16x32xf32>
    %127 = arith.mulf %119, %119 : vector<16x1xf32>
    %128 = arith.subf %124, %127 : vector<16x1xf32>
    %cst_48 = arith.constant 9.99999974E-6 : f32
    %129 = vector.broadcast %cst_48 : f32 to vector<16x1xf32>
    %130 = arith.addf %128, %129 : vector<16x1xf32>
    %131 = math.rsqrt %130 : vector<16x1xf32>
    %132 = vector.broadcast %131 : vector<16x1xf32> to vector<16x32xf32>
    %133 = arith.mulf %126, %132 : vector<16x32xf32>
    %134 = vector.broadcast %10 : vector<1x32xf32> to vector<16x32xf32>
    %135 = arith.mulf %133, %134 : vector<16x32xf32>
    %136 = vector.broadcast %11 : vector<1x32xf32> to vector<16x32xf32>
    %137 = arith.addf %135, %136 : vector<16x32xf32>
    %138 = arith.truncf %137 : vector<16x32xf32> to vector<16x32xbf16>
    %cst_49 = arith.constant dense<0.000000e+00> : vector<16x32xf32>
    %139 = tpu.matmul %138, %7, %cst_49 {dimension_numbers = #tpu.dot_dimension_numbers<[1], [0], [0], [1], [0, 0, 1, 1], [], []>} : vector<16x32xbf16>, vector<32x32xbf16>, vector<16x32xf32> -> vector<16x32xf32>
    %cst_50 = arith.constant 0.000000e+00 : f32
    %140 = vector.broadcast %cst_50 : f32 to vector<16x32xf32>
    %141 = arith.cmpf ogt, %139, %140 : vector<16x32xf32>
    %142 = math.exp %139 : vector<16x32xf32>
    %cst_51 = arith.constant 1.000000e+00 : f32
    %143 = vector.broadcast %cst_51 : f32 to vector<16x32xf32>
    %144 = arith.subf %142, %143 : vector<16x32xf32>
    %145 = arith.select %141, %139, %144 : vector<16x32xi1>, vector<16x32xf32>
    %146 = arith.truncf %145 : vector<16x32xf32> to vector<16x32xbf16>
    %cst_52 = arith.constant dense<0.000000e+00> : vector<16x32xf32>
    %147 = tpu.matmul %146, %9, %cst_52 {dimension_numbers = #tpu.dot_dimension_numbers<[1], [0], [0], [1], [0, 0, 1, 1], [], []>} : vector<16x32xbf16>, vector<32x32xbf16>, vector<16x32xf32> -> vector<16x32xf32>
    %148 = vector.broadcast %12 : vector<1x32xf32> to vector<16x32xf32>
    %149 = arith.addf %147, %148 : vector<16x32xf32>
    %150 = arith.addf %115, %149 : vector<16x32xf32>
    %cst_53 = arith.constant dense<0.000000e+00> : vector<16xf32>
    %151 = vector.multi_reduction <add>, %150, %cst_53 [1] : vector<16x32xf32> to vector<16xf32>
    %152 = vector.shape_cast %151 : vector<16xf32> to vector<16x1xf32>
    %cst_54 = arith.constant 3.200000e+01 : f32
    %153 = vector.broadcast %cst_54 : f32 to vector<16x1xf32>
    %154 = arith.divf %152, %153 : vector<16x1xf32>
    %155 = arith.mulf %150, %150 : vector<16x32xf32>
    %cst_55 = arith.constant dense<0.000000e+00> : vector<16xf32>
    %156 = vector.multi_reduction <add>, %155, %cst_55 [1] : vector<16x32xf32> to vector<16xf32>
    %157 = vector.shape_cast %156 : vector<16xf32> to vector<16x1xf32>
    %cst_56 = arith.constant 3.200000e+01 : f32
    %158 = vector.broadcast %cst_56 : f32 to vector<16x1xf32>
    %159 = arith.divf %157, %158 : vector<16x1xf32>
    %160 = vector.broadcast %154 : vector<16x1xf32> to vector<16x32xf32>
    %161 = arith.subf %150, %160 : vector<16x32xf32>
    %162 = arith.mulf %154, %154 : vector<16x1xf32>
    %163 = arith.subf %159, %162 : vector<16x1xf32>
    %cst_57 = arith.constant 9.99999974E-6 : f32
    %164 = vector.broadcast %cst_57 : f32 to vector<16x1xf32>
    %165 = arith.addf %163, %164 : vector<16x1xf32>
    %166 = math.rsqrt %165 : vector<16x1xf32>
    %167 = vector.broadcast %166 : vector<16x1xf32> to vector<16x32xf32>
    %168 = arith.mulf %161, %167 : vector<16x32xf32>
    %169 = vector.broadcast %17 : vector<1x32xf32> to vector<16x32xf32>
    %170 = arith.mulf %168, %169 : vector<16x32xf32>
    %171 = vector.broadcast %18 : vector<1x32xf32> to vector<16x32xf32>
    %172 = arith.addf %170, %171 : vector<16x32xf32>
    %173 = arith.truncf %172 : vector<16x32xf32> to vector<16x32xbf16>
    %cst_58 = arith.constant dense<0.000000e+00> : vector<16x32xf32>
    %174 = tpu.matmul %173, %14, %cst_58 {dimension_numbers = #tpu.dot_dimension_numbers<[1], [0], [0], [1], [0, 0, 1, 1], [], []>} : vector<16x32xbf16>, vector<32x32xbf16>, vector<16x32xf32> -> vector<16x32xf32>
    %cst_59 = arith.constant 0.000000e+00 : f32
    %175 = vector.broadcast %cst_59 : f32 to vector<16x32xf32>
    %176 = arith.cmpf ogt, %174, %175 : vector<16x32xf32>
    %177 = math.exp %174 : vector<16x32xf32>
    %cst_60 = arith.constant 1.000000e+00 : f32
    %178 = vector.broadcast %cst_60 : f32 to vector<16x32xf32>
    %179 = arith.subf %177, %178 : vector<16x32xf32>
    %180 = arith.select %176, %174, %179 : vector<16x32xi1>, vector<16x32xf32>
    %181 = arith.truncf %180 : vector<16x32xf32> to vector<16x32xbf16>
    %cst_61 = arith.constant dense<0.000000e+00> : vector<16x32xf32>
    %182 = tpu.matmul %181, %16, %cst_61 {dimension_numbers = #tpu.dot_dimension_numbers<[1], [0], [0], [1], [0, 0, 1, 1], [], []>} : vector<16x32xbf16>, vector<32x32xbf16>, vector<16x32xf32> -> vector<16x32xf32>
    %183 = vector.broadcast %19 : vector<1x32xf32> to vector<16x32xf32>
    %184 = arith.addf %182, %183 : vector<16x32xf32>
    %185 = arith.addf %150, %184 : vector<16x32xf32>
    %c0_62 = arith.constant 0 : index
    %c64 = arith.constant 64 : index
    %186 = vector.load %arg1[%c0_62, %c64] : memref<16x128xf32, #tpu.memory_space<vmem>>, vector<16x32xf32>
    %cst_63 = arith.constant dense<0.000000e+00> : vector<16x32xf32>
    %187 = tpu.matmul %185, %20, %cst_63 {dimension_numbers = #tpu.dot_dimension_numbers<[1], [0], [0], [1], [0, 0, 1, 1], [], []>} : vector<16x32xf32>, vector<32x32xf32>, vector<16x32xf32> -> vector<16x32xf32>
    %188 = vector.broadcast %21 : vector<1x32xf32> to vector<16x32xf32>
    %189 = arith.addf %187, %188 : vector<16x32xf32>
    %190 = arith.addf %189, %186 : vector<16x32xf32>
    %cst_64 = arith.constant 0.000000e+00 : f32
    %191 = vector.broadcast %cst_64 : f32 to vector<16x32xf32>
    %192 = arith.cmpf oge, %190, %191 : vector<16x32xf32>
    %cst_65 = arith.constant 1.000000e+00 : f32
    %cst_66 = arith.constant 0.000000e+00 : f32
    %193 = vector.broadcast %cst_65 : f32 to vector<16x32xf32>
    %194 = vector.broadcast %cst_66 : f32 to vector<16x32xf32>
    %195 = arith.select %192, %193, %194 : vector<16x32xi1>, vector<16x32xf32>
    %196 = arith.truncf %195 : vector<16x32xf32> to vector<16x32xbf16>
    %cst_67 = arith.constant dense<0.000000e+00> : vector<16x32xf32>
    %197 = tpu.matmul %196, %23, %cst_67 {dimension_numbers = #tpu.dot_dimension_numbers<[1], [0], [0], [1], [0, 0, 1, 1], [], []>} : vector<16x32xbf16>, vector<32x32xbf16>, vector<16x32xf32> -> vector<16x32xf32>
    %198 = vector.broadcast %24 : vector<1x32xf32> to vector<16x32xf32>
    %199 = arith.addf %197, %198 : vector<16x32xf32>
    %cst_68 = arith.constant 0.000000e+00 : f32
    %200 = vector.broadcast %cst_68 : f32 to vector<16x32xf32>
    %201 = arith.cmpf ogt, %199, %200 : vector<16x32xf32>
    %202 = math.exp %199 : vector<16x32xf32>
    %cst_69 = arith.constant 1.000000e+00 : f32
    %203 = vector.broadcast %cst_69 : f32 to vector<16x32xf32>
    %204 = arith.subf %202, %203 : vector<16x32xf32>
    %205 = arith.select %201, %199, %204 : vector<16x32xi1>, vector<16x32xf32>
    %206 = arith.addf %185, %205 : vector<16x32xf32>
    %c0_70 = arith.constant 0 : index
    %c96_71 = arith.constant 96 : index
    %207 = vector.load %arg1[%c0_70, %c96_71] : memref<16x128xf32, #tpu.memory_space<vmem>>, vector<16x32xf32>
    %cst_72 = arith.constant dense<0.000000e+00> : vector<16x32xf32>
    %208 = tpu.matmul %206, %20, %cst_72 {dimension_numbers = #tpu.dot_dimension_numbers<[1], [0], [0], [1], [0, 0, 1, 1], [], []>} : vector<16x32xf32>, vector<32x32xf32>, vector<16x32xf32> -> vector<16x32xf32>
    %209 = vector.broadcast %21 : vector<1x32xf32> to vector<16x32xf32>
    %210 = arith.addf %208, %209 : vector<16x32xf32>
    %211 = arith.addf %210, %207 : vector<16x32xf32>
    %cst_73 = arith.constant 0.000000e+00 : f32
    %212 = vector.broadcast %cst_73 : f32 to vector<16x32xf32>
    %213 = arith.cmpf oge, %211, %212 : vector<16x32xf32>
    %cst_74 = arith.constant 1.000000e+00 : f32
    %cst_75 = arith.constant 0.000000e+00 : f32
    %214 = vector.broadcast %cst_74 : f32 to vector<16x32xf32>
    %215 = vector.broadcast %cst_75 : f32 to vector<16x32xf32>
    %216 = arith.select %213, %214, %215 : vector<16x32xi1>, vector<16x32xf32>
    %c0_76 = arith.constant 0 : index
    %c0_77 = arith.constant 0 : index
    %217 = vector.load %arg3[%c0_76, %c0_77] : memref<32x128xf32, #tpu.memory_space<vmem>>, vector<32x128xf32>
    %cst_78 = arith.constant dense<0.000000e+00> : vector<16x128xf32>
    %218 = tpu.matmul %216, %217, %cst_78 {dimension_numbers = #tpu.dot_dimension_numbers<[1], [0], [0], [1], [0, 0, 1, 1], [], []>} : vector<16x32xf32>, vector<32x128xf32>, vector<16x128xf32> -> vector<16x128xf32>
    %c0_79 = arith.constant 0 : index
    %c0_80 = arith.constant 0 : index
    %219 = vector.load %arg4[%c0_79, %c0_80] : memref<16x128xf32, #tpu.memory_space<vmem>>, vector<16x128xf32>
    tpu.vector_store %arg4[%c0_79, %c0_80], %218 {strides = array<i32>} : memref<16x128xf32, #tpu.memory_space<vmem>>, vector<16x128xf32>,
    return
  }
  func.func @transform_0(%arg0: i32) -> (i32, i32) {
    %c0_i32 = arith.constant 0 : i32
    %c0_i32_0 = arith.constant 0 : i32
    return %arg0, %c0_i32 : i32, i32
  }
  func.func @transform_1(%arg0: i32) -> (i32, i32) {
    %c0_i32 = arith.constant 0 : i32
    %c0_i32_0 = arith.constant 0 : i32
    %c0_i32_1 = arith.constant 0 : i32
    return %c0_i32, %c0_i32_0 : i32, i32
  }
  func.func @transform_2(%arg0: i32) -> (i32, i32) {
    %c0_i32 = arith.constant 0 : i32
    %c0_i32_0 = arith.constant 0 : i32
    %c0_i32_1 = arith.constant 0 : i32
    return %c0_i32, %c0_i32_0 : i32, i32
  }
  func.func @transform_3(%arg0: i32) -> (i32, i32) {
    %c0_i32 = arith.constant 0 : i32
    %c0_i32_0 = arith.constant 0 : i32
    return %arg0, %c0_i32 : i32, i32
  }
}

</mosaic_0001>

<bundles_post_ra>
// kernel: tpu_custom_call.1
= control target key start
LH: loop header
LB: loop body
LE: loop exit
PB: predicated region body
PF: predicated region fallthrough
CT: control target
= control target key end

     0   :  { %vm25_vm0 = vcmask 130048   ;;  %s1947_s0 = inlined_call_operand.vmem [shape: f32[16,128], index: 0, kind: input, shape index: {}]   ;;  %s1948_s1 = inlined_call_operand.vmem [shape: f32[248,32], index: 1, kind: input, shape index: {}]   ;;  %s1949_s2 = inlined_call_operand.vmem [shape: f32[32,128], index: 2, kind: input, shape index: {}]   ;;  %s1950_s3 = inlined_call_operand.hbm [shape: f32[16,128], index: 3, kind: output, shape index: {}]  }
   0x1   :  { %v19_v0 = vld [vmem:[%s1948_s1 + $0x8] sm:$0xff]  ;;  %v18_v1 = vld [vmem:[%s1948_s1] sm:$0xff] }
   0x2   :  { %v1560_v2 = vld [vmem:[%s1947_s0] sm:$0xff]  ;;  %1322 = vmatprep.subr.mxu0 %v19_v0 }
   0x3   :  { %1326 = vmatprep.mubr.msk.f32.mxu0 %vm25_vm0, %v1560_v2 }
   0x4   :  { %8 = vsyncpa [#allocation3], 0  ;;  %1323 = vmatpush3.msra.mxu0 %v19_v0  ;;  %v1566_v3 = vld [vmem:[%s1947_s0 + $0x8] sm:$0xff]  ;;  %v1223_v5 = vld [vmem:[%s1948_s1 + $0x10] ss:$0 sm:$0xff]  ;;  %vm149_vm1 = vcmask 261120  }
   0x5   :  { %1324 = vmatprep.subr.mxu0 %v18_v1  ;;  %v109_v15 = vld [vmem:[%s1948_s1 + $0x28] sm:$0xff]  ;;  %v110_v16 = vld [vmem:[%s1948_s1 + $0x30] sm:$0xff]  ;;  %v107_v17 = vld [vmem:[%s1948_s1 + $0x18] sm:$0xff]  ;;  %v1523_v18 = vmov 0.0   ;;  %vm1524_vm2 = vmmov 0   ;;  %s1525_s16 = smov 96  }
   0x6   :  { %1325 = vmatpush3.msra.mxu0 %v18_v1  ;;  %1329 = vmatprep.subr.bf16.mxu1 %v1523_v18  ;;  %v1596_v19 = vpack.c.bf16 %v110_v16, %v109_v15  ;;  %v108_v20 = vld [vmem:[%s1948_s1 + $0x20] sm:$0xff]  ;;  %v1616_v39 = vld [vmem:[%s1948_s1 + $0x58] ss:$0 sm:$0xff]  ;;  %v1623_v44 = vld [vmem:[%s1948_s1 + $0x59] ss:$0 sm:$0xff]  ;;  %s1527_s30 = smov 32  }
   0x7   :  { %1327 = vmatmul.mubr.msk.f32.vlgmr.msra.gmra.mxu0 %vm25_vm0, %v1566_v3  ;;  %1333 = vmatprep.mubr.msk.bf16.mxu1 %vm1524_vm2, %v1523_v18  ;;  %v1607_v21 = vpack.c.bf16 %v108_v20, %v107_v17  ;;  %v115_v49 = vld [vmem:[%s1948_s1 + $0x48] sm:$0xff]  ;;  %v116_v50 = vld [vmem:[%s1948_s1 + $0x50] sm:$0xff]  ;;  %v113_v52 = vld [vmem:[%s1948_s1 + $0x38] sm:$0xff] }
   0x8   :  { %1337 = vmatprep.subr.bf16.mxu0 %v1523_v18  ;;  %1341 = vmatprep.mubr.msk.bf16.mxu0 %vm1524_vm2, %v1523_v18  ;;  %v1637_v51 = vpack.c.bf16 %v116_v50, %v115_v49  ;;  %v114_v53 = vld [vmem:[%s1948_s1 + $0x40] sm:$0xff] }
   0x9   :  { %1330 = vmatpush3.bf16.msra.mxu1 %v1596_v19  ;;  %v1647_v54 = vpack.c.bf16 %v114_v53, %v113_v52  ;;  %v1700_v49 = vld [vmem:[%s1948_s1 + $0xa0] ss:$0 sm:$0xff] }
   0xa   :  { %1331 = vmatprep.subr.bf16.mxu1 %v1523_v18  ;;  %1338 = vmatpush3.bf16.msra.mxu0 %v1637_v51 }
   0xb   :  { %1339 = vmatprep.subr.bf16.mxu0 %v1523_v18 }
   0xd   :  { %1332 = vmatpush3.bf16.msra.mxu1 %v1607_v21 }
   0xe   :  { %1345 = vmatprep.subr.bf16.mxu1 %v1523_v18  ;;  %1340 = vmatpush3.bf16.msra.mxu0 %v1647_v54 }
   0xf   :  { %1353 = vmatprep.subr.bf16.mxu0 %v1523_v18 }
  0xc7   :  { %v1328_v4 = vpop.f32.mrf.mxu0 }
  0xc8   :  { %v1572_v7 = vadd.f32 %v1328_v4, %v1223_v5 }
  0xc9   :  { %v98_v6 = vpop.f32.mrf.mxu0 }
  0xca   :  { %v1574_v8 = vadd.f32 %v1223_v5, %v98_v6  ;;  %v160_v12 = vmul.f32 %v1572_v7, %v1572_v7  ;;  %v153_v13 = vsel %vm149_vm1, %v1572_v7, 0.0  ;;  %v1657_v6 = vld [vmem:[%s1948_s1 + $0x5a] ss:$0 sm:$0xff] }
  0xcc   :  { %v150_v9 = vsel %vm149_vm1, %v1574_v8, 0.0  ;;  %v159_v10 = vmul.f32 %v1574_v8, %v1574_v8  ;;  %v164_v14 = vsel %vm149_vm1, %v160_v12, 0.0 }
  0xcd   :  { %151 = vadd.xlane.f32.xlu0 %v150_v9 }
  0xce   :  { %v161_v11 = vsel %vm149_vm1, %v159_v10, 0.0 }
  0xcf   :  { %162 = vadd.xlane.f32.xlu1 %v161_v11 }
  0xd1   :  { %154 = vadd.xlane.f32.xlu0 %v153_v13 }
  0xd3   :  { %165 = vadd.xlane.f32.xlu1 %v164_v14 }
 0x156   :  { %v152_v22 = vpop.xlane.xlu0 %151 }
 0x157   :  { %v157_v23 = vmul.f32 0.03125, %v152_v22 }
 0x158   :  { %v163_v24 = vpop.xlane.xlu1 %162 }
 0x159   :  { %v171_v25 = vmul.f32 %v157_v23, %v157_v23  ;;  %v167_v26 = vmul.f32 0.03125, %v163_v24  ;;  %v169_v36 = vsub.f32 %v1574_v8, %v157_v23 }
 0x15a   :  { %v155_v27 = vpop.xlane.xlu0 %154 }
 0x15b   :  { %v173_v28 = vsub.f32 %v167_v26, %v171_v25  ;;  %v158_v29 = vmul.f32 0.03125, %v155_v27  ;;  %v124_v25 = vld [vmem:[%s1948_s1 + $0x70] sm:$0xff]  ;;  %v122_v27 = vld [vmem:[%s1948_s1 + $0x60] sm:$0xff] }
 0x15c   :  { %v166_v30 = vpop.xlane.xlu1 %165 }
 0x15d   :  { %v175_v31 = vadd.f32 1e-05, %v173_v28  ;;  %v172_v32 = vmul.f32 %v158_v29, %v158_v29  ;;  %v168_v33 = vmul.f32 0.03125, %v166_v30  ;;  %v170_v40 = vsub.f32 %v1572_v7, %v158_v29  ;;  %v123_v28 = vld [vmem:[%s1948_s1 + $0x68] sm:$0xff] }
 0x15e   :  { %v1692_v29 = vpack.c.bf16 %v123_v28, %v122_v27  ;;  %v1753_v27 = vld [vmem:[%s1948_s1 + $0xb0] sm:$0xff]  ;;  %v1760_v28 = vld [vmem:[%s1948_s1 + $0xa8] sm:$0xff] }
 0x15f   :  { %1461 = vrsqrt.f32 %v175_v31  ;;  %v174_v34 = vsub.f32 %v168_v33, %v172_v32 }
 0x161   :  { %v176_v35 = vadd.f32 1e-05, %v174_v34 }
 0x163   :  { %1463 = vrsqrt.f32 %v176_v35 }
 0x16c   :  { %v1462_v37 = vpop.eup %1461 }
 0x16d   :  { %v179_v38 = vmul.f32 %v1462_v37, %v169_v36 }
 0x16f   :  { %v185_v43 = vmul.f32 %v1616_v39, %v179_v38 }
 0x170   :  { %v1464_v41 = vpop.eup %1463 }
 0x171   :  { %v180_v42 = vmul.f32 %v1464_v41, %v170_v40  ;;  %v191_v46 = vadd.f32 %v1623_v44, %v185_v43 }
 0x173   :  { %v186_v45 = vmul.f32 %v1616_v39, %v180_v42 }
 0x175   :  { %v192_v47 = vadd.f32 %v1623_v44, %v186_v45 }
 0x177   :  { %v193_v48 = vpack.c.bf16 %v192_v47, %v191_v46 }
 0x179   :  { %1334 = vmatmul.mubr.msk.bf16.vlgmr.msra.gmra.mxu1 %vm149_vm1, %v193_v48 }
 0x17a   :  { %1349 = vmatprep.mubr.msk.bf16.mxu1 %vm1524_vm2, %v1523_v18 }
 0x239   :  { %v231_v55 = vpop.f32.mrf.mxu1 }
 0x23a   :  { %v240_v56 = vmul.f32 1.442695, %v231_v55  ;;  %vm238_vm3 = vcmp.gt.f32.partialorder %v231_v55, 0.0 }
 0x23b   :  { %v1335_v57 = vpop.f32.mrf.mxu1 }
 0x23c   :  { %1465 = vpow2.f32 %v240_v56  ;;  %v1707_v56 = vld [vmem:[%s1948_s1 + $0xa1] ss:$0 sm:$0xff] }
 0x23d   :  { %v234_v58 = vpop.f32.mrf.mxu1 }
 0x23e   :  { %v242_v59 = vmul.f32 1.442695, %v234_v58  ;;  %vm239_vm4 = vcmp.gt.f32.partialorder %v234_v58, 0.0 }
 0x23f   :  { %v1336_v60 = vpop.f32.mrf.mxu1 }
 0x240   :  { %1467 = vpow2.f32 %v242_v59 }
 0x249   :  { %v1466_v61 = vpop.eup %1465 }
 0x24a   :  { %v1229_v62 = vadd.f32 -1.0, %v1466_v61  ;;  %v130_v61 = vld [vmem:[%s1948_s1 + $0x90] sm:$0xff] }
 0x24c   :  { %v246_v1 = vsel %vm238_vm3, %v231_v55, %v1229_v62  ;;  %v131_v62 = vld [vmem:[%s1948_s1 + $0x98] sm:$0xff] }
 0x24d   :  { %v1468_v63 = vpop.eup %1467 }
 0x24e   :  { %v1230_v0 = vadd.f32 -1.0, %v1468_v63  ;;  %v1719_v63 = vpack.c.bf16 %v131_v62, %v130_v61 }
 0x250   :  { %v247_v4 = vsel %vm239_vm4, %v234_v58, %v1230_v0  ;;  %v128_v0 = vld [vmem:[%s1948_s1 + $0x80] sm:$0xff] }
 0x251   :  { %v248_v5 = vpack.c.bf16 %v247_v4, %v246_v1  ;;  %v129_v1 = vld [vmem:[%s1948_s1 + $0x88] sm:$0xff] }
 0x252   :  { %v1729_v4 = vpack.c.bf16 %v129_v1, %v128_v0 }
 0x253   :  { %1342 = vmatmul.mubr.msk.bf16.vlgmr.msra.gmra.mxu0 %vm149_vm1, %v248_v5 }
 0x254   :  { %1357 = vmatprep.mubr.msk.bf16.mxu0 %vm1524_vm2, %v1523_v18  ;;  %1354 = vmatpush3.bf16.msra.mxu0 %v1719_v63 }
 0x255   :  { %1355 = vmatprep.subr.bf16.mxu0 %v1523_v18 }
 0x258   :  { %1356 = vmatpush3.bf16.msra.mxu0 %v1729_v4 }
 0x259   :  { %1372 = vmatprep.subr.bf16.mxu0 %v1523_v18 }
 0x313   :  { %v290_v9 = vpop.f32.mrf.mxu0 }
 0x314   :  { %v291_v10 = vadd.f32 %v1657_v6, %v290_v9 }
 0x315   :  { %v1343_v11 = vpop.f32.mrf.mxu0 }
 0x316   :  { %v1661_v12 = vadd.f32 %v291_v10, %v1574_v8 }
 0x317   :  { %v293_v13 = vpop.f32.mrf.mxu0 }
 0x318   :  { %v294_v14 = vadd.f32 %v1657_v6, %v293_v13  ;;  %v299_v15 = vsel %vm149_vm1, %v1661_v12, 0.0  ;;  %v307_v16 = vmul.f32 %v1661_v12, %v1661_v12 }
 0x319   :  { %300 = vadd.xlane.f32.xlu0 %v299_v15  ;;  %v1344_v17 = vpop.f32.mrf.mxu0 }
 0x31a   :  { %v1669_v20 = vadd.f32 %v294_v14, %v1572_v7  ;;  %v309_v22 = vsel %vm149_vm1, %v307_v16, 0.0  ;;  %v125_v7 = vld [vmem:[%s1948_s1 + $0x78] sm:$0xff] }
 0x31b   :  { %v1683_v26 = vpack.c.bf16 %v125_v7, %v124_v25  ;;  %v1739_v25 = vld [vmem:[%s1948_s1 + $0xc0] sm:$0xff]  ;;  %v1746_v7 = vld [vmem:[%s1948_s1 + $0xb8] sm:$0xff] }
 0x31c   :  { %v302_v8 = vsel %vm149_vm1, %v1669_v20, 0.0  ;;  %v308_v23 = vmul.f32 %v1669_v20, %v1669_v20 }
 0x31d   :  { %310 = vadd.xlane.f32.xlu0 %v309_v22  ;;  %303 = vadd.xlane.f32.xlu1 %v302_v8 }
 0x31e   :  { %v312_v24 = vsel %vm149_vm1, %v308_v23, 0.0  ;;  %1346 = vmatpush3.bf16.msra.mxu1 %v1683_v26 }
 0x31f   :  { %1347 = vmatprep.subr.bf16.mxu1 %v1523_v18 }
 0x321   :  { %313 = vadd.xlane.f32.xlu1 %v312_v24 }
 0x322   :  { %1348 = vmatpush3.bf16.msra.mxu1 %v1692_v29 }
 0x323   :  { %1361 = vmatprep.subr.mxu1 %v1739_v25 }
 0x332   :  { %534 = vrot.lane.b32.xlu1 %v1566_v3, %s1525_s16 }
 0x333   :  { %532 = vrot.lane.b32.xlu0 %v1560_v2, %s1525_s16 }
 0x3a2   :  { %v301_v30 = vpop.xlane.xlu0 %300 }
 0x3a3   :  { %v305_v31 = vmul.f32 0.03125, %v301_v30  ;;  %v1770_v30 = vld [vmem:[%s1948_s1 + $0xa2] ss:$0 sm:$0xff] }
 0x3a5   :  { %v319_v34 = vmul.f32 %v305_v31, %v305_v31  ;;  %v317_v46 = vsub.f32 %v1661_v12, %v305_v31 }
 0x3a6   :  { %v311_v32 = vpop.xlane.xlu0 %310  ;;  %v304_v33 = vpop.xlane.xlu1 %303 }
 0x3a7   :  { %v315_v35 = vmul.f32 0.03125, %v311_v32  ;;  %v306_v36 = vmul.f32 0.03125, %v304_v33 }
 0x3a9   :  { %v321_v37 = vsub.f32 %v315_v35, %v319_v34  ;;  %v320_v41 = vmul.f32 %v306_v36, %v306_v36  ;;  %v318_v50 = vsub.f32 %v1669_v20, %v306_v36 }
 0x3aa   :  { %v314_v38 = vpop.xlane.xlu1 %313 }
 0x3ab   :  { %v323_v40 = vadd.f32 1e-05, %v321_v37  ;;  %v316_v42 = vmul.f32 0.03125, %v314_v38 }
 0x3ad   :  { %1469 = vrsqrt.f32 %v323_v40  ;;  %v322_v43 = vsub.f32 %v316_v42, %v320_v41  ;;  %v1807_v42 = vld [vmem:[%s1948_s1 + $0xc8] ss:$0 sm:$0xff] }
 0x3af   :  { %v324_v45 = vadd.f32 1e-05, %v322_v43 }
 0x3b1   :  { %1471 = vrsqrt.f32 %v324_v45  ;;  %v535_v45 = vpop.permute.xlu1 %534 }
 0x3ba   :  { %v1470_v47 = vpop.eup %1469 }
 0x3bb   :  { %v327_v48 = vmul.f32 %v1470_v47, %v317_v46 }
 0x3bd   :  { %v333_v55 = vmul.f32 %v1700_v49, %v327_v48  ;;  %v533_v48 = vpop.permute.xlu0 %532 }
 0x3be   :  { %v1472_v52 = vpop.eup %1471 }
 0x3bf   :  { %v328_v53 = vmul.f32 %v1472_v52, %v318_v50  ;;  %v339_v58 = vadd.f32 %v1707_v56, %v333_v55 }
 0x3c1   :  { %v334_v57 = vmul.f32 %v1700_v49, %v328_v53 }
 0x3c3   :  { %v340_v59 = vadd.f32 %v1707_v56, %v334_v57 }
 0x3c5   :  { %v341_v60 = vpack.c.bf16 %v340_v59, %v339_v58  ;;  %v1823_v59 = vld [vmem:[%s1948_s1 + $0xf0] ss:$0 sm:$0xff] }
 0x3c7   :  { %1350 = vmatmul.mubr.msk.bf16.vlgmr.msra.gmra.mxu1 %vm149_vm1, %v341_v60 }
 0x3c8   :  { %1362 = vmatpush3.msra.mxu1 %v1739_v25 }
 0x3c9   :  { %1363 = vmatprep.subr.mxu1 %v1746_v7 }
 0x3ca   :  { %1364 = vmatpush3.msra.mxu1 %v1746_v7 }
 0x3cb   :  { %1365 = vmatprep.subr.mxu1 %v1753_v27 }
 0x3cc   :  { %1366 = vmatpush3.msra.mxu1 %v1753_v27 }
 0x3cd   :  { %1367 = vmatprep.subr.mxu1 %v1760_v28 }
 0x3ce   :  { %1368 = vmatpush3.msra.mxu1 %v1760_v28 }
 0x3cf   :  { %1380 = vmatprep.subr.bf16.mxu1 %v1523_v18 }
 0x487   :  { %v379_v5 = vpop.f32.mrf.mxu1 }
 0x488   :  { %v388_v9 = vmul.f32 1.442695, %v379_v5  ;;  %vm386_vm5 = vcmp.gt.f32.partialorder %v379_v5, 0.0 }
 0x489   :  { %v1351_v10 = vpop.f32.mrf.mxu1 }
 0x48a   :  { %1473 = vpow2.f32 %v388_v9 }
 0x48b   :  { %v382_v11 = vpop.f32.mrf.mxu1 }
 0x48c   :  { %v390_v13 = vmul.f32 1.442695, %v382_v11  ;;  %vm387_vm6 = vcmp.gt.f32.partialorder %v382_v11, 0.0 }
 0x48d   :  { %v1352_v14 = vpop.f32.mrf.mxu1 }
 0x48e   :  { %1475 = vpow2.f32 %v390_v13 }
 0x497   :  { %v1474_v15 = vpop.eup %1473 }
 0x498   :  { %v1236_v16 = vadd.f32 -1.0, %v1474_v15 }
 0x49a   :  { %v394_v8 = vsel %vm386_vm5, %v379_v5, %v1236_v16 }
 0x49b   :  { %v1476_v17 = vpop.eup %1475 }
 0x49c   :  { %v1237_v22 = vadd.f32 -1.0, %v1476_v17 }
 0x49e   :  { %v395_v23 = vsel %vm387_vm6, %v382_v11, %v1237_v22 }
 0x49f   :  { %v396_v24 = vpack.c.bf16 %v395_v23, %v394_v8 }
 0x4a1   :  { %1358 = vmatmul.mubr.msk.bf16.vlgmr.msra.gmra.mxu0 %vm149_vm1, %v396_v24 }
 0x4a2   :  { %1376 = vmatprep.mubr.msk.bf16.mxu0 %vm1524_vm2, %v1523_v18 }
 0x561   :  { %v438_v31 = vpop.f32.mrf.mxu0 }
 0x562   :  { %v439_v32 = vadd.f32 %v1770_v30, %v438_v31 }
 0x563   :  { %v1359_v33 = vpop.f32.mrf.mxu0 }
 0x564   :  { %v445_v34 = vadd.f32 %v439_v32, %v1661_v12  ;;  %v144_v12 = vld [vmem:[%s1948_s1 + $0xe0] sm:$0xff] }
 0x565   :  { %v441_v35 = vpop.f32.mrf.mxu0 }
 0x566   :  { %v442_v36 = vadd.f32 %v1770_v30, %v441_v35  ;;  %1369 = vmatprep.mubr.msk.f32.mxu1 %vm149_vm1, %v445_v34 }
 0x567   :  { %v1360_v37 = vpop.f32.mrf.mxu0 }
 0x568   :  { %v446_v38 = vadd.f32 %v442_v36, %v1669_v20  ;;  %v145_v20 = vld [vmem:[%s1948_s1 + $0xe8] sm:$0xff] }
 0x569   :  { %v1790_v40 = vpack.c.bf16 %v145_v20, %v144_v12 }
 0x56a   :  { %1370 = vmatmul.mubr.msk.f32.vlgmr.msra.gmra.mxu1 %vm149_vm1, %v446_v38 }
 0x56b   :  { %1381 = vmatpush3.bf16.msra.mxu1 %v1596_v19  ;;  %1384 = vmatprep.mubr.msk.bf16.mxu1 %vm1524_vm2, %v1523_v18  ;;  %v142_v19 = vld [vmem:[%s1948_s1 + $0xd0] sm:$0xff] }
 0x56c   :  { %1382 = vmatprep.subr.bf16.mxu1 %v1523_v18  ;;  %1373 = vmatpush3.bf16.msra.mxu0 %v1790_v40 }
 0x56d   :  { %1374 = vmatprep.subr.bf16.mxu0 %v1523_v18 }
 0x56f   :  { %1383 = vmatpush3.bf16.msra.mxu1 %v1607_v21  ;;  %v143_v21 = vld [vmem:[%s1948_s1 + $0xd8] sm:$0xff]  ;;  %s1526_s1 = smov 64  }
 0x570   :  { %1396 = vmatprep.subr.bf16.mxu1 %v1523_v18  ;;  %v1800_v41 = vpack.c.bf16 %v143_v21, %v142_v19 }
 0x572   :  { %1375 = vmatpush3.bf16.msra.mxu0 %v1800_v41 }
 0x573   :  { %1388 = vmatprep.subr.bf16.mxu0 %v1523_v18 }
 0x62a   :  { %v1371_v43 = vpop.f32.mrf.mxu1 }
 0x62b   :  { %v529_v46 = vadd.f32 %v1371_v43, %v1807_v42 }
 0x62c   :  { %v523_v47 = vpop.f32.mrf.mxu1 }
 0x62d   :  { %v539_v50 = vadd.f32 %v535_v45, %v529_v46  ;;  %v524_v52 = vadd.f32 %v1807_v42, %v523_v47 }
 0x62f   :  { %vm541_vm7 = vcmp.ge.f32.partialorder %v539_v50, 0.0  ;;  %v538_v53 = vadd.f32 %v533_v48, %v524_v52 }
 0x630   :  { %v543_v55 = vsel %vm541_vm7, 1.0, %v1523_v18 }
 0x631   :  { %vm540_vm8 = vcmp.ge.f32.partialorder %v538_v53, 0.0 }
 0x632   :  { %v542_v57 = vsel %vm540_vm8, 1.0, %v1523_v18 }
 0x633   :  { %v544_v58 = vpack.c.bf16 %v543_v55, %v542_v57 }
 0x635   :  { %1377 = vmatmul.mubr.msk.bf16.vlgmr.msra.gmra.mxu0 %vm149_vm1, %v544_v58 }
 0x636   :  { %1389 = vmatpush3.bf16.msra.mxu0 %v1637_v51  ;;  %1392 = vmatprep.mubr.msk.bf16.mxu0 %vm1524_vm2, %v1523_v18 }
 0x637   :  { %1390 = vmatprep.subr.bf16.mxu0 %v1523_v18 }
 0x63a   :  { %1391 = vmatpush3.bf16.msra.mxu0 %v1647_v54 }
 0x63b   :  { %1404 = vmatprep.subr.bf16.mxu0 %v1523_v18 }
 0x6f5   :  { %v586_v60 = vpop.f32.mrf.mxu0 }
 0x6f6   :  { %v587_v61 = vadd.f32 %v1823_v59, %v586_v60 }
 0x6f7   :  { %v1378_v62 = vpop.f32.mrf.mxu0 }
 0x6f8   :  { %v595_v0 = vmul.f32 1.442695, %v587_v61  ;;  %vm593_vm9 = vcmp.gt.f32.partialorder %v587_v61, 0.0 }
 0x6f9   :  { %v589_v51 = vpop.f32.mrf.mxu0 }
 0x6fa   :  { %1477 = vpow2.f32 %v595_v0  ;;  %v590_v1 = vadd.f32 %v1823_v59, %v589_v51 }
 0x6fb   :  { %v1379_v5 = vpop.f32.mrf.mxu0 }
 0x6fc   :  { %v597_v9 = vmul.f32 1.442695, %v590_v1  ;;  %vm594_vm10 = vcmp.gt.f32.partialorder %v590_v1, 0.0 }
 0x6fe   :  { %1479 = vpow2.f32 %v597_v9 }
 0x707   :  { %v1478_v54 = vpop.eup %1477 }
 0x708   :  { %v1245_v10 = vadd.f32 -1.0, %v1478_v54 }
 0x70a   :  { %v601_v11 = vsel %vm593_vm9, %v587_v61, %v1245_v10 }
 0x70b   :  { %v1480_v13 = vpop.eup %1479  ;;  %v1827_v14 = vadd.f32 %v601_v11, %v445_v34 }
 0x70c   :  { %v1246_v15 = vadd.f32 -1.0, %v1480_v13 }
 0x70d   :  { %v605_v16 = vsel %vm149_vm1, %v1827_v14, 0.0  ;;  %v613_v24 = vmul.f32 %v1827_v14, %v1827_v14 }
 0x70e   :  { %v602_v17 = vsel %vm594_vm10, %v590_v1, %v1246_v15  ;;  %606 = vadd.xlane.f32.xlu1 %v605_v16 }
 0x70f   :  { %v1831_v22 = vadd.f32 %v602_v17, %v446_v38  ;;  %v615_v32 = vsel %vm149_vm1, %v613_v24, 0.0 }
 0x711   :  { %v608_v8 = vsel %vm149_vm1, %v1831_v22, 0.0  ;;  %v614_v23 = vmul.f32 %v1831_v22, %v1831_v22 }
 0x712   :  { %609 = vadd.xlane.f32.xlu0 %v608_v8 }
 0x713   :  { %v618_v31 = vsel %vm149_vm1, %v614_v23, 0.0 }
 0x714   :  { %619 = vadd.xlane.f32.xlu1 %v618_v31 }
 0x716   :  { %616 = vadd.xlane.f32.xlu0 %v615_v32 }
 0x797   :  { %v607_v33 = vpop.xlane.xlu1 %606 }
 0x798   :  { %v611_v35 = vmul.f32 0.03125, %v607_v33 }
 0x79a   :  { %v625_v19 = vmul.f32 %v611_v35, %v611_v35  ;;  %v623_v52 = vsub.f32 %v1827_v14, %v611_v35 }
 0x79b   :  { %v610_v34 = vpop.xlane.xlu0 %609 }
 0x79c   :  { %v612_v36 = vmul.f32 0.03125, %v610_v34 }
 0x79d   :  { %v620_v37 = vpop.xlane.xlu1 %619 }
 0x79e   :  { %v626_v38 = vmul.f32 %v612_v36, %v612_v36  ;;  %v622_v12 = vmul.f32 0.03125, %v620_v37  ;;  %v624_v48 = vsub.f32 %v1831_v22, %v612_v36 }
 0x79f   :  { %v617_v20 = vpop.xlane.xlu0 %616 }
 0x7a0   :  { %v628_v21 = vsub.f32 %v622_v12, %v626_v38  ;;  %v621_v43 = vmul.f32 0.03125, %v617_v20 }
 0x7a2   :  { %v630_v45 = vadd.f32 1e-05, %v628_v21  ;;  %v627_v46 = vsub.f32 %v621_v43, %v625_v19 }
 0x7a4   :  { %1481 = vrsqrt.f32 %v630_v45  ;;  %v629_v47 = vadd.f32 1e-05, %v627_v46 }
 0x7a6   :  { %1483 = vrsqrt.f32 %v629_v47 }
 0x7b1   :  { %v1482_v50 = vpop.eup %1481 }
 0x7b2   :  { %v634_v53 = vmul.f32 %v1482_v50, %v624_v48 }
 0x7b3   :  { %v1484_v55 = vpop.eup %1483 }
 0x7b4   :  { %v633_v57 = vmul.f32 %v1484_v55, %v623_v52  ;;  %v636_v58 = vmul.f32 %v1616_v39, %v634_v53 }
 0x7b6   :  { %v635_v60 = vmul.f32 %v1616_v39, %v633_v57  ;;  %v638_v62 = vadd.f32 %v1623_v44, %v636_v58 }
 0x7b8   :  { %v637_v61 = vadd.f32 %v1623_v44, %v635_v60 }
 0x7ba   :  { %v639_v0 = vpack.c.bf16 %v638_v62, %v637_v61 }
 0x7bc   :  { %1385 = vmatmul.mubr.msk.bf16.vlgmr.msra.gmra.mxu1 %vm149_vm1, %v639_v0 }
 0x7bd   :  { %1397 = vmatpush3.bf16.msra.mxu1 %v1683_v26  ;;  %1400 = vmatprep.mubr.msk.bf16.mxu1 %vm1524_vm2, %v1523_v18 }
 0x7be   :  { %1398 = vmatprep.subr.bf16.mxu1 %v1523_v18 }
 0x7c1   :  { %1399 = vmatpush3.bf16.msra.mxu1 %v1692_v29 }
 0x7c2   :  { %1412 = vmatprep.subr.mxu1 %v1739_v25 }
 0x87c   :  { %v677_v51 = vpop.f32.mrf.mxu1 }
 0x87d   :  { %v686_v39 = vmul.f32 1.442695, %v677_v51  ;;  %vm684_vm11 = vcmp.gt.f32.partialorder %v677_v51, 0.0 }
 0x87e   :  { %v1386_v1 = vpop.f32.mrf.mxu1 }
 0x87f   :  { %1485 = vpow2.f32 %v686_v39 }
 0x880   :  { %v680_v5 = vpop.f32.mrf.mxu1 }
 0x881   :  { %v688_v44 = vmul.f32 1.442695, %v680_v5  ;;  %vm685_vm12 = vcmp.gt.f32.partialorder %v680_v5, 0.0 }
 0x882   :  { %v1387_v9 = vpop.f32.mrf.mxu1 }
 0x883   :  { %1487 = vpow2.f32 %v688_v44 }
 0x88c   :  { %v1486_v54 = vpop.eup %1485 }
 0x88d   :  { %v1248_v10 = vadd.f32 -1.0, %v1486_v54 }
 0x88f   :  { %v692_v13 = vsel %vm684_vm11, %v677_v51, %v1248_v10 }
 0x890   :  { %v1488_v26 = vpop.eup %1487 }
 0x891   :  { %v1249_v11 = vadd.f32 -1.0, %v1488_v26 }
 0x893   :  { %v693_v15 = vsel %vm685_vm12, %v680_v5, %v1249_v11 }
 0x894   :  { %v694_v16 = vpack.c.bf16 %v693_v15, %v692_v13 }
 0x896   :  { %1393 = vmatmul.mubr.msk.bf16.vlgmr.msra.gmra.mxu0 %vm149_vm1, %v694_v16 }
 0x897   :  { %1405 = vmatpush3.bf16.msra.mxu0 %v1719_v63  ;;  %1408 = vmatprep.mubr.msk.bf16.mxu0 %vm1524_vm2, %v1523_v18 }
 0x898   :  { %1406 = vmatprep.subr.bf16.mxu0 %v1523_v18 }
 0x89b   :  { %1407 = vmatpush3.bf16.msra.mxu0 %v1729_v4 }
 0x89c   :  { %1423 = vmatprep.subr.bf16.mxu0 %v1523_v18 }
 0x956   :  { %v732_v29 = vpop.f32.mrf.mxu0 }
 0x957   :  { %v733_v17 = vadd.f32 %v1657_v6, %v732_v29 }
 0x958   :  { %v1394_v8 = vpop.f32.mrf.mxu0 }
 0x959   :  { %v1863_v23 = vadd.f32 %v733_v17, %v1827_v14 }
 0x95a   :  { %v735_v24 = vpop.f32.mrf.mxu0 }
 0x95b   :  { %v736_v31 = vadd.f32 %v1657_v6, %v735_v24  ;;  %v741_v63 = vsel %vm149_vm1, %v1863_v23, 0.0  ;;  %v749_v32 = vmul.f32 %v1863_v23, %v1863_v23 }
 0x95c   :  { %742 = vadd.xlane.f32.xlu0 %v741_v63  ;;  %v1395_v4 = vpop.f32.mrf.mxu0 }
 0x95d   :  { %v1871_v33 = vadd.f32 %v736_v31, %v1831_v22  ;;  %v751_v34 = vsel %vm149_vm1, %v749_v32, 0.0 }
 0x95f   :  { %v744_v14 = vsel %vm149_vm1, %v1871_v33, 0.0  ;;  %v750_v35 = vmul.f32 %v1871_v33, %v1871_v33 }
 0x960   :  { %752 = vadd.xlane.f32.xlu0 %v751_v34  ;;  %745 = vadd.xlane.f32.xlu1 %v744_v14 }
 0x961   :  { %v754_v6 = vsel %vm149_vm1, %v750_v35, 0.0 }
 0x964   :  { %755 = vadd.xlane.f32.xlu1 %v754_v6 }
 0x975   :  { %960 = vrot.lane.b32.xlu1 %v1566_v3, %s1526_s1 }
 0x976   :  { %958 = vrot.lane.b32.xlu0 %v1560_v2, %s1526_s1 }
 0x979   :  { %1108 = vrot.lane.b32.xlu1 %v1560_v2, %s1527_s30 }
 0x97d   :  { %1110 = vrot.lane.b32.xlu1 %v1566_v3, %s1527_s30 }
 0x9e5   :  { %v743_v36 = vpop.xlane.xlu0 %742 }
 0x9e6   :  { %v747_v37 = vmul.f32 0.03125, %v743_v36 }
 0x9e8   :  { %v761_v20 = vmul.f32 %v747_v37, %v747_v37  ;;  %v759_v52 = vsub.f32 %v1863_v23, %v747_v37 }
 0x9e9   :  { %v753_v38 = vpop.xlane.xlu0 %752  ;;  %v746_v12 = vpop.xlane.xlu1 %745 }
 0x9ea   :  { %v757_v22 = vmul.f32 0.03125, %v753_v38  ;;  %v748_v19 = vmul.f32 0.03125, %v746_v12 }
 0x9ec   :  { %v763_v21 = vsub.f32 %v757_v22, %v761_v20  ;;  %v762_v46 = vmul.f32 %v748_v19, %v748_v19  ;;  %v760_v57 = vsub.f32 %v1871_v33, %v748_v19 }
 0x9ed   :  { %v756_v43 = vpop.xlane.xlu1 %755 }
 0x9ee   :  { %v765_v45 = vadd.f32 1e-05, %v763_v21  ;;  %v758_v47 = vmul.f32 0.03125, %v756_v43 }
 0x9f0   :  { %1489 = vrsqrt.f32 %v765_v45  ;;  %v764_v48 = vsub.f32 %v758_v47, %v762_v46 }
 0x9f2   :  { %v766_v50 = vadd.f32 1e-05, %v764_v48  ;;  %v1122_v48 = vld [vmem:[%s1949_s2 + $0x10] sm:$0xff] }
 0x9f4   :  { %1491 = vrsqrt.f32 %v766_v50  ;;  %v1121_v50 = vld [vmem:[%s1949_s2 + $0x8] sm:$0xff] }
 0x9fd   :  { %v1490_v53 = vpop.eup %1489 }
 0x9fe   :  { %v769_v55 = vmul.f32 %v1490_v53, %v759_v52  ;;  %v1120_v52 = vld [vmem:[%s1949_s2] sm:$0xff] }
 0xa00   :  { %v771_v61 = vmul.f32 %v1700_v49, %v769_v55 }
 0xa01   :  { %v1492_v58 = vpop.eup %1491 }
 0xa02   :  { %v770_v60 = vmul.f32 %v1492_v58, %v760_v57  ;;  %v773_v0 = vadd.f32 %v1707_v56, %v771_v61 }
 0xa04   :  { %v772_v62 = vmul.f32 %v1700_v49, %v770_v60 }
 0xa06   :  { %v774_v51 = vadd.f32 %v1707_v56, %v772_v62 }
 0xa08   :  { %v775_v39 = vpack.c.bf16 %v774_v51, %v773_v0 }
 0xa0a   :  { %1401 = vmatmul.mubr.msk.bf16.vlgmr.msra.gmra.mxu1 %vm149_vm1, %v775_v39 }
 0xa0b   :  { %1413 = vmatpush3.msra.mxu1 %v1739_v25 }
 0xa0c   :  { %1414 = vmatprep.subr.mxu1 %v1746_v7 }
 0xa0d   :  { %1415 = vmatpush3.msra.mxu1 %v1746_v7 }
 0xa0e   :  { %1416 = vmatprep.subr.mxu1 %v1753_v27 }
 0xa0f   :  { %1417 = vmatpush3.msra.mxu1 %v1753_v27 }
 0xa10   :  { %1418 = vmatprep.subr.mxu1 %v1760_v28 }
 0xa11   :  { %1419 = vmatpush3.msra.mxu1 %v1760_v28 }
 0xa12   :  { %1431 = vmatprep.subr.mxu1 %v1739_v25 }
 0xaca   :  { %v813_v49 = vpop.f32.mrf.mxu1 }
 0xacb   :  { %v822_v56 = vmul.f32 1.442695, %v813_v49  ;;  %vm820_vm13 = vcmp.gt.f32.partialorder %v813_v49, 0.0 }
 0xacc   :  { %v1402_v1 = vpop.f32.mrf.mxu1 }
 0xacd   :  { %1493 = vpow2.f32 %v822_v56 }
 0xace   :  { %v816_v5 = vpop.f32.mrf.mxu1 }
 0xacf   :  { %v824_v44 = vmul.f32 1.442695, %v816_v5  ;;  %vm821_vm14 = vcmp.gt.f32.partialorder %v816_v5, 0.0 }
 0xad0   :  { %v1403_v9 = vpop.f32.mrf.mxu1 }
 0xad1   :  { %1495 = vpow2.f32 %v824_v44 }
 0xada   :  { %v1494_v54 = vpop.eup %1493 }
 0xadb   :  { %v1252_v10 = vadd.f32 -1.0, %v1494_v54 }
 0xadd   :  { %v828_v13 = vsel %vm820_vm13, %v813_v49, %v1252_v10 }
 0xade   :  { %v1496_v26 = vpop.eup %1495 }
 0xadf   :  { %v1253_v11 = vadd.f32 -1.0, %v1496_v26 }
 0xae1   :  { %v829_v15 = vsel %vm821_vm14, %v816_v5, %v1253_v11 }
 0xae2   :  { %v830_v16 = vpack.c.bf16 %v829_v15, %v828_v13 }
 0xae4   :  { %1409 = vmatmul.mubr.msk.bf16.vlgmr.msra.gmra.mxu0 %vm149_vm1, %v830_v16 }
 0xae5   :  { %1424 = vmatpush3.bf16.msra.mxu0 %v1790_v40  ;;  %1427 = vmatprep.mubr.msk.bf16.mxu0 %vm1524_vm2, %v1523_v18 }
 0xae6   :  { %1425 = vmatprep.subr.bf16.mxu0 %v1523_v18 }
 0xae9   :  { %1426 = vmatpush3.bf16.msra.mxu0 %v1800_v41  ;;  %v961_v41 = vpop.permute.xlu1 %960 }
 0xaed   :  { %v1109_v53 = vpop.permute.xlu1 %1108 }
 0xaf1   :  { %v1111_v57 = vpop.permute.xlu1 %1110 }
 0xba4   :  { %v868_v29 = vpop.f32.mrf.mxu0 }
 0xba5   :  { %v869_v17 = vadd.f32 %v1770_v30, %v868_v29 }
 0xba6   :  { %v1410_v8 = vpop.f32.mrf.mxu0 }
 0xba7   :  { %v875_v24 = vadd.f32 %v869_v17, %v1863_v23 }
 0xba8   :  { %v871_v31 = vpop.f32.mrf.mxu0 }
 0xba9   :  { %v872_v40 = vadd.f32 %v1770_v30, %v871_v31  ;;  %1420 = vmatprep.mubr.msk.f32.mxu1 %vm149_vm1, %v875_v24 }
 0xbaa   :  { %v1411_v63 = vpop.f32.mrf.mxu0 }
 0xbab   :  { %v876_v32 = vadd.f32 %v872_v40, %v1871_v33  ;;  %v959_v33 = vpop.permute.xlu0 %958 }
 0xbad   :  { %1421 = vmatmul.mubr.msk.f32.vlgmr.msra.gmra.mxu1 %vm149_vm1, %v876_v32 }
 0xbae   :  { %1432 = vmatpush3.msra.mxu1 %v1739_v25 }
 0xbaf   :  { %1433 = vmatprep.subr.mxu1 %v1746_v7 }
 0xbb0   :  { %1434 = vmatpush3.msra.mxu1 %v1746_v7 }
 0xbb1   :  { %1435 = vmatprep.subr.mxu1 %v1753_v27 }
 0xbb2   :  { %1436 = vmatpush3.msra.mxu1 %v1753_v27 }
 0xbb3   :  { %1437 = vmatprep.subr.mxu1 %v1760_v28 }
 0xbb4   :  { %1438 = vmatpush3.msra.mxu1 %v1760_v28 }
 0xc6d   :  { %v1422_v30 = vpop.f32.mrf.mxu1 }
 0xc6e   :  { %v955_v23 = vadd.f32 %v1422_v30, %v1807_v42 }
 0xc6f   :  { %v949_v4 = vpop.f32.mrf.mxu1 }
 0xc70   :  { %v965_v34 = vadd.f32 %v961_v41, %v955_v23  ;;  %v950_v25 = vadd.f32 %v1807_v42, %v949_v4 }
 0xc72   :  { %vm967_vm15 = vcmp.ge.f32.partialorder %v965_v34, 0.0  ;;  %v964_v14 = vadd.f32 %v959_v33, %v950_v25 }
 0xc73   :  { %v969_v7 = vsel %vm967_vm15, 1.0, %v1523_v18 }
 0xc74   :  { %vm966_vm0 = vcmp.ge.f32.partialorder %v964_v14, 0.0 }
 0xc75   :  { %v968_v27 = vsel %vm966_vm0, 1.0, %v1523_v18 }
 0xc76   :  { %v970_v35 = vpack.c.bf16 %v969_v7, %v968_v27 }
 0xc78   :  { %1428 = vmatmul.mubr.msk.bf16.vlgmr.msra.gmra.mxu0 %vm149_vm1, %v970_v35 }
 0xd38   :  { %v1008_v28 = vpop.f32.mrf.mxu0 }
 0xd39   :  { %v1009_v6 = vadd.f32 %v1823_v59, %v1008_v28 }
 0xd3a   :  { %v1429_v36 = vpop.f32.mrf.mxu0 }
 0xd3b   :  { %v1017_v37 = vmul.f32 1.442695, %v1009_v6  ;;  %vm1015_vm2 = vcmp.gt.f32.partialorder %v1009_v6, 0.0 }
 0xd3c   :  { %v1011_v38 = vpop.f32.mrf.mxu0 }
 0xd3d   :  { %1497 = vpow2.f32 %v1017_v37  ;;  %v1012_v12 = vadd.f32 %v1823_v59, %v1011_v38  ;;  %v1123_v59 = vld [vmem:[%s1949_s2 + $0x18] sm:$0xff]  ;;  %s1528_s2 = smov [#allocation2]  }
 0xd3e   :  { %v1430_v20 = vpop.f32.mrf.mxu0  ;;  %1442 = vmatprep.subr.mxu0 %v1123_v59  ;;  %s1212_s12 = sshll.u32 %s1528_s2, 4  ;;  %s1213_s12 = int_to_ptr.vmem [resolvable:$true] %s1212_s12 }
 0xd3f   :  { %v1019_v22 = vmul.f32 1.442695, %v1012_v12  ;;  %vm1016_vm3 = vcmp.gt.f32.partialorder %v1012_v12, 0.0  ;;  %1443 = vmatpush3.msra.mxu0 %v1123_v59  ;;  %s1501_s13 = scalar_lea.vmem %s1213_s12, 256  ;;  %p1506_p1 = scmp.lt.s32.totalorder %s1213_s12, %s1213_s12 }
 0xd40   :  { %1444 = vmatprep.subr.mxu0 %v1122_v48  ;;  %p1502_p0 = scmp.ne.s32.totalorder %s1213_s12, %s1501_s13  ;;  %p1507_p2 = scmp.lt.s32.totalorder %s1501_s13, %s1501_s13 }
 0xd41   :  { %1499 = vpow2.f32 %v1019_v22  ;;  %1445 = vmatpush3.msra.mxu0 %v1122_v48 }
 0xd42   :  { %1446 = vmatprep.subr.mxu0 %v1121_v50  ;;  %p1508_p3 = por %p1507_p2, %p1506_p1 }
 0xd43   :  { %1447 = vmatpush3.msra.mxu0 %v1121_v50 }
 0xd44   :  { %1448 = vmatprep.subr.mxu0 %v1120_v52  ;;  %p1509_p4 = pnand %p1508_p3, %p1502_p0 }
 0xd45   :  { %1449 = vmatpush3.msra.mxu0 %v1120_v52 }
 0xd4a   :  { %v1498_v19 = vpop.eup %1497 }
 0xd4b   :  { %v1258_v21 = vadd.f32 -1.0, %v1498_v19 }
 0xd4d   :  { %v1023_v43 = vsel %vm1015_vm2, %v1009_v6, %v1258_v21 }
 0xd4e   :  { %v1500_v45 = vpop.eup %1499  ;;  %v1025_v2 = vadd.f32 %v1023_v43, %v875_v24 }
 0xd4f   :  { %v1259_v46 = vadd.f32 -1.0, %v1500_v45 }
 0xd50   :  { %1439 = vmatprep.mubr.msk.f32.mxu1 %vm149_vm1, %v1025_v2 }
 0xd51   :  { %v1024_v3 = vsel %vm1016_vm3, %v1012_v12, %v1259_v46 }
 0xd52   :  { %v1026_v47 = vadd.f32 %v1024_v3, %v876_v32 }
 0xd54   :  { %1440 = vmatmul.mubr.msk.f32.vlgmr.msra.gmra.mxu1 %vm149_vm1, %v1026_v47 }
 0xe14   :  { %v1441_v55 = vpop.f32.mrf.mxu1 }
 0xe15   :  { %v1105_v58 = vadd.f32 %v1441_v55, %v1807_v42 }
 0xe16   :  { %v1099_v60 = vpop.f32.mrf.mxu1 }
 0xe17   :  { %v1115_v61 = vadd.f32 %v1111_v57, %v1105_v58  ;;  %v1100_v62 = vadd.f32 %v1807_v42, %v1099_v60 }
 0xe19   :  { %v1114_v0 = vadd.f32 %v1109_v53, %v1100_v62  ;;  %vm1117_vm4 = vcmp.ge.f32.partialorder %v1115_v61, 0.0 }
 0xe1a   :  { %v1119_v39 = vsel %vm1117_vm4, 1.0, %v1523_v18 }
 0xe1b   :  { %vm1116_vm5 = vcmp.ge.f32.partialorder %v1114_v0, 0.0 }
 0xe1c   :  { %v1118_v51 = vsel %vm1116_vm5, 1.0, %v1523_v18 }
 0xe1d   :  { %1450 = vmatprep.mubr.msk.f32.mxu0 %vm149_vm1, %v1118_v51 }
 0xe1e   :  { %1451 = vmatmul.mubr.msk.f32.vlgmr.msra.gmra.mxu0 %vm149_vm1, %v1119_v39 }
 0xede   :  { %v1452_v49 = vpop.f32.mrf.mxu0 }
 0xedf   :  { %1206 = vst [vmem:[#allocation2 + $0x8] sm:$0xff] %v1452_v49 }
 0xee0   :  { %v1196_v56 = vpop.f32.mrf.mxu0 }
 0xee1   :  { %1205 = vst [vmem:[#allocation2] sm:$0xff] %v1196_v56 }
 0xee2   :  { %1512 = shalt.err (!%p1509_p4)
}
 0xee3   :  { %s1529_s14 = smov 128   ;;  %s1530_s15 = smov 8  }
 0xee4   :  { %1218 = dma.vmem_to_hbm [thread:$0]  %s1213_s12, 256, %s1950_s3, [#allocation3], %s1529_s14, %s1529_s14, %s1530_s15  }
 0xee5   :  { %1521 = dma.done.wait [#allocation3], 256  }
 0xee6   :  { %1522 = vsyncadd [#allocation3], 4294967040 }
 0xee7   :  { %1222 = vsyncpa [#allocation3], 1 }

</bundles_post_ra>
